<compile_context>
chip_gen: v6e
topology: v6e:2x2x1
jax: 0.10.0
libtpu: 0.0.40
codegen_flags: <defaults>
</compile_context>

<pallas_src>
import functools

import jax
import jax.numpy as jnp
from jax.experimental import pallas as pl
from jax.experimental.pallas import tpu as pltpu


def _critic_kernel(state_ref, action_ref, w1s_ref, w1a_ref, b1_ref,
                   w2_ref, b2_ref, w3_ref, b3_ref, o_ref, *, compute_dtype):
    # ---- layer 1: fused "concat" via split weight (two matmuls, one bias) ----
    s = state_ref[...].astype(compute_dtype)
    a = action_ref[...].astype(compute_dtype)
    h1 = (
        jnp.dot(s, w1s_ref[...].astype(compute_dtype),
                preferred_element_type=jnp.float32)
        + jnp.dot(a, w1a_ref[...].astype(compute_dtype),
                  preferred_element_type=jnp.float32)
        + b1_ref[...]
    )
    h1 = jnp.maximum(h1, 0.0)                                   # f32 epilogue

    # ---- layer 2 ----
    h2 = jnp.dot(h1.astype(compute_dtype), w2_ref[...].astype(compute_dtype),
                 preferred_element_type=jnp.float32) + b2_ref[...]
    h2 = jnp.maximum(h2, 0.0)

    # ---- layer 3 (hidden -> 1): VPU mul + XLU lane reduce, bias from SMEM ----
    q = jnp.sum(h2 * w3_ref[...], axis=-1, keepdims=True) + b3_ref[0, 0]  # (TB, 1)

    # Lane-dense store: broadcast the scalar Q across the 128-lane pad so the
    # store is a full unmasked vst; the wrapper slices column 0.
    o_ref[...] = jnp.broadcast_to(q, o_ref.shape).astype(o_ref.dtype)


def _round_up(x, m):
    return ((x + m - 1) // m) * m


def cnn_critic_forward(state, action, params, *, use_bf16=False):
    """CNNCritic forward.

    state:  (B, state_dim)  float32
    action: (B, action_dim) float32
    params: dict with w1 (in, hidden), b1 (1, hidden), w2 (hidden, hidden),
            b2 (1, hidden), w3 (hidden, 1), b3 (1, 1)
    use_bf16: feed bf16 to the MXU (f32 accumulate / f32 epilogue) -- halves
              memory traffic on v6e/v7x; keep False for bit-faithful f32.
    """
    B, state_dim = state.shape
    action_dim = action.shape[1]
    hidden = params["w1"].shape[1]
    out_size = params["w3"].shape[1]
    assert params["w1"].shape[0] == state_dim + action_dim
    # TODO(synk): head implemented as a lane reduction; generalize for output_size > 1.
    assert out_size == 1, "CNNCritic Q-head is scalar (output_size == 1)"

    # Split the first layer's weight so state/action never need concatenation
    # (removes the HBM round-trip of the concatenated activations).
    w1_s = params["w1"][:state_dim, :]
    w1_a = params["w1"][state_dim:, :]
    w3_row = params["w3"].reshape(1, hidden)      # (hidden, 1) -> (1, hidden)
    b3 = params["b3"].reshape(1, 1)               # scalar, lives in SMEM

    # Batch tiling: big tiles (multiple of 8 rows) so the pipeline amortizes
    # per-step overhead; tiny batches collapse to a single small tile.
    TB = min(512, _round_up(B, 8))
    B_pad = _round_up(B, TB)
    if B_pad != B:
        pad = ((0, B_pad - B), (0, 0))
        state = jnp.pad(state, pad)
        action = jnp.pad(action, pad)

    OUT_LANES = 128                               # lane-dense output slab
    grid = (B_pad // TB,)

    kernel = functools.partial(
        _critic_kernel,
        compute_dtype=jnp.bfloat16 if use_bf16 else jnp.float32)

    out_padded = pl.pallas_call(
        kernel,
        out_shape=jax.ShapeDtypeStruct((B_pad, OUT_LANES), jnp.float32),
        grid=grid,
        in_specs=[
            # streamed activations: one batch tile per grid step
            pl.BlockSpec((TB, state_dim), lambda i: (i, 0)),
            pl.BlockSpec((TB, action_dim), lambda i: (i, 0)),
            # VMEM-resident weights/biases: constant block -> no re-DMA per step
            pl.BlockSpec((state_dim, hidden), lambda i: (0, 0)),
            pl.BlockSpec((action_dim, hidden), lambda i: (0, 0)),
            pl.BlockSpec((1, hidden), lambda i: (0, 0)),
            pl.BlockSpec((hidden, hidden), lambda i: (0, 0)),
            pl.BlockSpec((1, hidden), lambda i: (0, 0)),
            pl.BlockSpec((1, hidden), lambda i: (0, 0)),
            # final bias as an SMEM scalar (folded into the reduce epilogue)
            pl.BlockSpec(memory_space=pltpu.MemorySpace.SMEM),
        ],
        out_specs=pl.BlockSpec((TB, OUT_LANES), lambda i: (i, 0)),
        compiler_params=pltpu.CompilerParams(
            dimension_semantics=("parallel",)),   # megacore sharding on v7x
    )(state, action, w1_s, w1_a, params["b1"], params["w2"], params["b2"],
      w3_row, b3)

    return out_padded[:B, :1]


def init_params(key, input_size, hidden_size, output_size):
    """Deterministic PyTorch-style (Kaiming-uniform-ish) init for nn.Linear."""
    def linear(k, fan_in, fan_out):
        kw, kb = jax.random.split(k)
        bound = 1.0 / jnp.sqrt(fan_in)
        w = jax.random.uniform(kw, (fan_in, fan_out), jnp.float32, -bound, bound)
        b = jax.random.uniform(kb, (1, fan_out), jnp.float32, -bound, bound)
        return w, b

    k1, k2, k3 = jax.random.split(key, 3)
    w1, b1 = linear(k1, input_size, hidden_size)
    w2, b2 = linear(k2, hidden_size, hidden_size)
    w3, b3 = linear(k3, hidden_size, output_size)
    return {"w1": w1, "b1": b1, "w2": w2, "b2": b2, "w3": w3, "b3": b3}


def reference_forward(state, action, params):
    """Pure-JAX reference for sanity checking."""
    x = jnp.concatenate([state, action], axis=1)
    h1 = jnp.maximum(x @ params["w1"] + params["b1"], 0.0)
    h2 = jnp.maximum(h1 @ params["w2"] + params["b2"], 0.0)
    return h2 @ params["w3"] + params["b3"]


if __name__ == "__main__":
    key = jax.random.PRNGKey(0)
    k_s, k_a, k_p = jax.random.split(key, 3)

    batch = 2
    state_dim = 12
    action_dim = 4
    input_size = state_dim + action_dim   # 16
    hidden_size = 32
    output_size = 1

    state = jax.random.normal(k_s, (batch, state_dim), jnp.float32)
    action = jax.random.normal(k_a, (batch, action_dim), jnp.float32)
    params = init_params(k_p, input_size, hidden_size, output_size)

    out = cnn_critic_forward(state, action, params)   # f32 path for exact check
    jax.block_until_ready(out)

    ref = reference_forward(state, action, params)
    assert out.shape == (batch, output_size)
    assert jnp.allclose(out, ref, atol=1e-5, rtol=1e-5)

    print("KERNEL_OK")
</pallas_src>

<mosaic_0001>
module attributes {stable_mosaic.version = 11 : i64} {
  func.func @_critic_kernel(%arg0: i32, %arg1: memref<8x12xf32, #tpu.memory_space<vmem>>, %arg2: memref<8x4xf32, #tpu.memory_space<vmem>>, %arg3: memref<12x32xf32, #tpu.memory_space<vmem>>, %arg4: memref<4x32xf32, #tpu.memory_space<vmem>>, %arg5: memref<1x32xf32, #tpu.memory_space<vmem>>, %arg6: memref<32x32xf32, #tpu.memory_space<vmem>>, %arg7: memref<1x32xf32, #tpu.memory_space<vmem>>, %arg8: memref<1x32xf32, #tpu.memory_space<vmem>>, %arg9: memref<1x1xf32, #tpu.memory_space<smem>>, %arg10: memref<8x128xf32, #tpu.memory_space<vmem>>) attributes {dimension_semantics = [#tpu.dimension_semantics<parallel>], iteration_bounds = array<i64: 1>, scalar_prefetch = 0 : i64, scratch_operands = 0 : i64, tpu.core_type = #tpu.core_type<tc>, window_params = [{transform_indices = @transform_0, window_bounds = array<i64: 8, 12>}, {transform_indices = @transform_1, window_bounds = array<i64: 8, 4>}, {pipeline_mode = #tpu.pipeline_mode<synchronous>, transform_indices = @transform_2, window_bounds = array<i64: 12, 32>}, {pipeline_mode = #tpu.pipeline_mode<synchronous>, transform_indices = @transform_3, window_bounds = array<i64: 4, 32>}, {pipeline_mode = #tpu.pipeline_mode<synchronous>, transform_indices = @transform_4, window_bounds = array<i64: 1, 32>}, {pipeline_mode = #tpu.pipeline_mode<synchronous>, transform_indices = @transform_5, window_bounds = array<i64: 32, 32>}, {pipeline_mode = #tpu.pipeline_mode<synchronous>, transform_indices = @transform_6, window_bounds = array<i64: 1, 32>}, {pipeline_mode = #tpu.pipeline_mode<synchronous>, transform_indices = @transform_7, window_bounds = array<i64: 1, 32>}, {transform_indices = @transform_8, window_bounds = array<i64: 1, 1>}, {transform_indices = @transform_9, window_bounds = array<i64: 8, 128>}]} {
    %c0 = arith.constant 0 : index
    %c0_0 = arith.constant 0 : index
    %0 = vector.load %arg1[%c0, %c0_0] : memref<8x12xf32, #tpu.memory_space<vmem>>, vector<8x12xf32>
    %c0_1 = arith.constant 0 : index
    %c0_2 = arith.constant 0 : index
    %1 = vector.load %arg2[%c0_1, %c0_2] : memref<8x4xf32, #tpu.memory_space<vmem>>, vector<8x4xf32>
    %c0_3 = arith.constant 0 : index
    %c0_4 = arith.constant 0 : index
    %2 = vector.load %arg3[%c0_3, %c0_4] : memref<12x32xf32, #tpu.memory_space<vmem>>, vector<12x32xf32>
    %cst = arith.constant dense<0.000000e+00> : vector<8x32xf32>
    %3 = tpu.matmul %0, %2, %cst {dimension_numbers = #tpu.dot_dimension_numbers<[1], [0], [0], [1], [0, 0, 1, 1], [], []>} : vector<8x12xf32>, vector<12x32xf32>, vector<8x32xf32> -> vector<8x32xf32>
    %c0_5 = arith.constant 0 : index
    %c0_6 = arith.constant 0 : index
    %4 = vector.load %arg4[%c0_5, %c0_6] : memref<4x32xf32, #tpu.memory_space<vmem>>, vector<4x32xf32>
    %cst_7 = arith.constant dense<0.000000e+00> : vector<8x32xf32>
    %5 = tpu.matmul %1, %4, %cst_7 {dimension_numbers = #tpu.dot_dimension_numbers<[1], [0], [0], [1], [0, 0, 1, 1], [], []>} : vector<8x4xf32>, vector<4x32xf32>, vector<8x32xf32> -> vector<8x32xf32>
    %6 = arith.addf %3, %5 : vector<8x32xf32>
    %c0_8 = arith.constant 0 : index
    %c0_9 = arith.constant 0 : index
    %7 = vector.load %arg5[%c0_8, %c0_9] : memref<1x32xf32, #tpu.memory_space<vmem>>, vector<1x32xf32>
    %8 = vector.broadcast %7 : vector<1x32xf32> to vector<8x32xf32>
    %9 = arith.addf %6, %8 : vector<8x32xf32>
    %cst_10 = arith.constant 0.000000e+00 : f32
    %10 = vector.broadcast %cst_10 : f32 to vector<8x32xf32>
    %11 = arith.maximumf %9, %10 : vector<8x32xf32>
    %c0_11 = arith.constant 0 : index
    %c0_12 = arith.constant 0 : index
    %12 = vector.load %arg6[%c0_11, %c0_12] : memref<32x32xf32, #tpu.memory_space<vmem>>, vector<32x32xf32>
    %cst_13 = arith.constant dense<0.000000e+00> : vector<8x32xf32>
    %13 = tpu.matmul %11, %12, %cst_13 {dimension_numbers = #tpu.dot_dimension_numbers<[1], [0], [0], [1], [0, 0, 1, 1], [], []>} : vector<8x32xf32>, vector<32x32xf32>, vector<8x32xf32> -> vector<8x32xf32>
    %c0_14 = arith.constant 0 : index
    %c0_15 = arith.constant 0 : index
    %14 = vector.load %arg7[%c0_14, %c0_15] : memref<1x32xf32, #tpu.memory_space<vmem>>, vector<1x32xf32>
    %15 = vector.broadcast %14 : vector<1x32xf32> to vector<8x32xf32>
    %16 = arith.addf %13, %15 : vector<8x32xf32>
    %cst_16 = arith.constant 0.000000e+00 : f32
    %17 = vector.broadcast %cst_16 : f32 to vector<8x32xf32>
    %18 = arith.maximumf %16, %17 : vector<8x32xf32>
    %c0_17 = arith.constant 0 : index
    %c0_18 = arith.constant 0 : index
    %19 = vector.load %arg8[%c0_17, %c0_18] : memref<1x32xf32, #tpu.memory_space<vmem>>, vector<1x32xf32>
    %20 = vector.broadcast %19 : vector<1x32xf32> to vector<8x32xf32>
    %21 = arith.mulf %18, %20 : vector<8x32xf32>
    %cst_19 = arith.constant dense<0.000000e+00> : vector<8xf32>
    %22 = vector.multi_reduction <add>, %21, %cst_19 [1] : vector<8x32xf32> to vector<8xf32>
    %23 = vector.shape_cast %22 : vector<8xf32> to vector<8x1xf32>
    %c0_20 = arith.constant 0 : index
    %c0_21 = arith.constant 0 : index
    %24 = memref.load %arg9[%c0_20, %c0_21] : memref<1x1xf32, #tpu.memory_space<smem>>
    %25 = vector.broadcast %24 : f32 to vector<8x1xf32>
    %26 = arith.addf %23, %25 : vector<8x1xf32>
    %27 = vector.shape_cast %26 : vector<8x1xf32> to vector<8x1xf32>
    %28 = vector.broadcast %27 : vector<8x1xf32> to vector<8x128xf32>
    %c0_22 = arith.constant 0 : index
    %c0_23 = arith.constant 0 : index
    %29 = vector.load %arg10[%c0_22, %c0_23] : memref<8x128xf32, #tpu.memory_space<vmem>>, vector<8x128xf32>
    tpu.vector_store %arg10[%c0_22, %c0_23], %28 {strides = array<i32>} : memref<8x128xf32, #tpu.memory_space<vmem>>, vector<8x128xf32>,
    return
  }
  func.func @transform_0(%arg0: i32) -> (i32, i32) {
    %c0_i32 = arith.constant 0 : i32
    %c0_i32_0 = arith.constant 0 : i32
    return %arg0, %c0_i32 : i32, i32
  }
  func.func @transform_1(%arg0: i32) -> (i32, i32) {
    %c0_i32 = arith.constant 0 : i32
    %c0_i32_0 = arith.constant 0 : i32
    return %arg0, %c0_i32 : i32, i32
  }
  func.func @transform_2(%arg0: i32) -> (i32, i32) {
    %c0_i32 = arith.constant 0 : i32
    %c0_i32_0 = arith.constant 0 : i32
    %c0_i32_1 = arith.constant 0 : i32
    return %c0_i32, %c0_i32_0 : i32, i32
  }
  func.func @transform_3(%arg0: i32) -> (i32, i32) {
    %c0_i32 = arith.constant 0 : i32
    %c0_i32_0 = arith.constant 0 : i32
    %c0_i32_1 = arith.constant 0 : i32
    return %c0_i32, %c0_i32_0 : i32, i32
  }
  func.func @transform_4(%arg0: i32) -> (i32, i32) {
    %c0_i32 = arith.constant 0 : i32
    %c0_i32_0 = arith.constant 0 : i32
    %c0_i32_1 = arith.constant 0 : i32
    return %c0_i32, %c0_i32_0 : i32, i32
  }
  func.func @transform_5(%arg0: i32) -> (i32, i32) {
    %c0_i32 = arith.constant 0 : i32
    %c0_i32_0 = arith.constant 0 : i32
    %c0_i32_1 = arith.constant 0 : i32
    return %c0_i32, %c0_i32_0 : i32, i32
  }
  func.func @transform_6(%arg0: i32) -> (i32, i32) {
    %c0_i32 = arith.constant 0 : i32
    %c0_i32_0 = arith.constant 0 : i32
    %c0_i32_1 = arith.constant 0 : i32
    return %c0_i32, %c0_i32_0 : i32, i32
  }
  func.func @transform_7(%arg0: i32) -> (i32, i32) {
    %c0_i32 = arith.constant 0 : i32
    %c0_i32_0 = arith.constant 0 : i32
    %c0_i32_1 = arith.constant 0 : i32
    return %c0_i32, %c0_i32_0 : i32, i32
  }
  func.func @transform_8(%arg0: i32) -> (i32, i32) {
    %c0_i32 = arith.constant 0 : i32
    %c0_i32_0 = arith.constant 0 : i32
    %c0_i32_1 = arith.constant 0 : i32
    return %c0_i32, %c0_i32_0 : i32, i32
  }
  func.func @transform_9(%arg0: i32) -> (i32, i32) {
    %c0_i32 = arith.constant 0 : i32
    %c0_i32_0 = arith.constant 0 : i32
    return %arg0, %c0_i32 : i32, i32
  }
}

</mosaic_0001>

<bundles_post_ra>
// kernel: tpu_custom_call.1
= control target key start
LH: loop header
LB: loop body
LE: loop exit
PB: predicated region body
PF: predicated region fallthrough
CT: control target
= control target key end

     0   :  { %15 = vsyncpa [#allocation4], 0  ;;  %s583_s0 = inlined_call_operand.hbm [shape: f32[8,12], index: 0, kind: input, shape index: {}]   ;;  %s584_s1 = inlined_call_operand.vmem [shape: f32[8,4], index: 1, kind: input, shape index: {}]   ;;  %s585_s2 = inlined_call_operand.vmem [shape: f32[12,32], index: 2, kind: input, shape index: {}]   ;;  %s586_s3 = inlined_call_operand.hbm [shape: f32[4,32], index: 3, kind: input, shape index: {}]   ;;  %s587_s4 = inlined_call_operand.vmem [shape: f32[1,32], index: 4, kind: input, shape index: {}]   ;;  %s588_s5 = inlined_call_operand.hbm [shape: f32[32,32], index: 5, kind: input, shape index: {}]   ;;  %s589_s6 = inlined_call_operand.vmem [shape: f32[1,32], index: 6, kind: input, shape index: {}]   ;;  %s590_s7 = inlined_call_operand.vmem [shape: f32[1,32], index: 7, kind: input, shape index: {}]   ;;  %s591_s8 = inlined_call_operand.<no memory space> [shape: f32[1,1], index: 8, kind: input, shape index: {}]   ;;  %s592_s9 = inlined_call_operand.hbm [shape: f32[8,128], index: 9, kind: output, shape index: {}]  }
   0x1   :  { %16 = vsyncpa [#allocation7], 0 }
   0x2   :  { %17 = vsyncpa [#allocation5], 0  ;;  %s492_s30 = smov [#allocation6]   ;;  %s493_s11 = smov [#allocation3]  }
   0x3   :  { %s38_s10 = sshll.u32 %s492_s30, 4  ;;  %s24_s12 = sshll.u32 %s493_s11, 4  ;;  %s39_s10 = int_to_ptr.vmem [resolvable:$true] %s38_s10  ;;  %s25_s12 = int_to_ptr.vmem [resolvable:$true] %s24_s12 }
   0x4   :  { %s414_s13 = scalar_lea.vmem %s39_s10, 64  ;;  %p419_p1 = scmp.lt.s32.totalorder %s39_s10, %s39_s10 }
   0x5   :  { %p415_p0 = scmp.ne.s32.totalorder %s39_s10, %s414_s13  ;;  %p420_p2 = scmp.lt.s32.totalorder %s414_s13, %s414_s13 }
   0x7   :  { %p421_p3 = por %p420_p2, %p419_p1 }
   0x9   :  { %p422_p4 = pnand %p421_p3, %p415_p0 }
   0xb   :  { %425 = shalt.err (!%p422_p4)
}
   0xc   :  { %41 = dma.hbm_to_vmem [thread:$0]  %s586_s3, 64, %s39_s10, [#allocation7]  }
   0xd   :  { %s434_s16 = scalar_lea.vmem %s25_s12, 128  ;;  %p439_p6 = scmp.lt.s32.totalorder %s25_s12, %s25_s12 }
   0xe   :  { %p435_p5 = scmp.ne.s32.totalorder %s25_s12, %s434_s16  ;;  %p440_p7 = scmp.lt.s32.totalorder %s434_s16, %s434_s16 }
  0x10   :  { %p441_p8 = por %p440_p7, %p439_p6 }
  0x12   :  { %p442_p9 = pnand %p441_p8, %p435_p5 }
  0x14   :  { %445 = shalt.err (!%p442_p9)
}
  0x15   :  { %27 = dma.hbm_to_vmem [thread:$0]  %s583_s0, 128, %s25_s12, [#allocation4]  }
  0x16   :  { %s494_s19 = smov [#allocation8]  }
  0x17   :  { %s49_s20 = sshll.u32 %s494_s19, 4  ;;  %s50_s20 = int_to_ptr.vmem [resolvable:$true] %s49_s20 }
  0x18   :  { %s454_s21 = scalar_lea.vmem %s50_s20, 512  ;;  %p459_p11 = scmp.lt.s32.totalorder %s50_s20, %s50_s20 }
  0x19   :  { %p455_p10 = scmp.ne.s32.totalorder %s50_s20, %s454_s21  ;;  %p460_p12 = scmp.lt.s32.totalorder %s454_s21, %s454_s21 }
  0x1b   :  { %p461_p13 = por %p460_p12, %p459_p11 }
  0x1d   :  { %p462_p0 = pnand %p461_p13, %p455_p10 }
  0x1f   :  { %465 = shalt.err (!%p462_p0)
}
  0x20   :  { %s495_s3 = smov 128   ;;  %s496_s22 = smov 8  }
  0x21   :  { %55 = dma.hbm_to_vmem [thread:$0]  %s588_s5, 512, %s50_s20, [#allocation7], %s495_s3, %s495_s3, %s496_s22  }
  0x22   :  { %486 = dma.done.wait [#allocation4], 128  }
  0x23   :  { %487 = vsyncadd [#allocation4], 4294967168 }
  0x24   :  { %488 = dma.done.wait [#allocation7], 576  }
  0x25   :  { %489 = vsyncadd [#allocation7], 4294966720  ;;  %v497_v0 = vmov 0.0   ;;  %vm498_vm0 = vmmov 0   ;;  %vm80_vm1 = vcmask 1043456   ;;  %vm76_vm2 = vcmask 31744  }
  0x26   :  { %375 = vmatprep.subr.mxu1 %v497_v0  ;;  %377 = vmatprep.mubr.msk.f32.mxu1 %vm498_vm0, %v497_v0  ;;  %v75_v1 = vld [vmem:[#allocation6] sm:$0xf]  ;;  %v72_v2 = vld [vmem:[%s584_s1] sm:$0xff]  ;;  %vm154_vm3 = vcmask 97280   ;;  %v241_v8 = vld [vmem:[#allocation8 + $0x8] sm:$0xff]  ;;  %vm251_vm4 = vcmask 261120   ;;  %v338_v26 = vstv %s591_s8 }
  0x27   :  { %387 = vmatprep.subr.mxu0 %v497_v0  ;;  %395 = vmatprep.mubr.msk.f32.mxu0 %vm498_vm0, %v497_v0  ;;  %v74_v3 = vld [vmem:[%s585_s2 + $0x8] sm:$0xf]  ;;  %v73_v4 = vld [vmem:[%s585_s2] sm:$0xff]  ;;  %v240_v9 = vld [vmem:[#allocation8] sm:$0xff]  ;;  %s499_s13 = smov [#allocation9]  }
  0x28   :  { %376 = vmatpush3.msk.msra.mxu1 %vm80_vm1, %v75_v1  ;;  %v71_v5 = vld [vmem:[#allocation3] sm:$0xff]  ;;  %s347_s14 = sshll.u32 %s499_s13, 4  ;;  %s348_s14 = int_to_ptr.vmem [resolvable:$true] %s347_s14 }
  0x29   :  { %378 = vmatmul.mubr.msk.f32.vlgmr.msra.gmra.mxu1 %vm76_vm2, %v72_v2  ;;  %380 = vmatprep.subr.mxu1 %v497_v0  ;;  %v243_v6 = vld [vmem:[#allocation8 + $0x18] sm:$0xff]  ;;  %v242_v7 = vld [vmem:[#allocation8 + $0x10] sm:$0xff]  ;;  %p471_p2 = scmp.lt.s32.totalorder %s348_s14, %s348_s14 }
  0x2a   :  { %381 = vmatpush3.msk.msra.mxu1 %vm80_vm1, %v74_v3  ;;  %384 = vmatprep.mubr.msk.f32.mxu1 %vm498_vm0, %v497_v0  ;;  %v361_v13 = vld [vmem:[%s587_s4] ss:$0 sm:$0xff] }
  0x2b   :  { %382 = vmatprep.subr.mxu1 %v497_v0  ;;  %388 = vmatpush3.msra.mxu0 %v243_v6  ;;  %v362_v18 = vld [vmem:[%s589_s6] ss:$0 sm:$0xff]  ;;  %s466_s6 = scalar_lea.vmem %s348_s14, 128 }
  0x2c   :  { %383 = vmatpush3.msra.mxu1 %v73_v4  ;;  %389 = vmatprep.subr.mxu0 %v497_v0  ;;  %v364_v22 = vld [vmem:[%s590_s7] ss:$0 sm:$0xff]  ;;  %p467_p1 = scmp.ne.s32.totalorder %s348_s14, %s466_s6  ;;  %p472_p3 = scmp.lt.s32.totalorder %s466_s6, %s466_s6 }
  0x2d   :  { %385 = vmatmul.mubr.msk.f32.vlgmr.msra.gmra.mxu1 %vm154_vm3, %v71_v5  ;;  %390 = vmatpush3.msra.mxu0 %v242_v7 }
  0x2e   :  { %391 = vmatprep.subr.mxu0 %v497_v0  ;;  %p473_p4 = por %p472_p3, %p471_p2 }
  0x2f   :  { %392 = vmatpush3.msra.mxu0 %v241_v8 }
  0x30   :  { %393 = vmatprep.subr.mxu0 %v497_v0  ;;  %p474_p5 = pnand %p473_p4, %p467_p1 }
  0x31   :  { %394 = vmatpush3.msra.mxu0 %v240_v9 }
  0xe9   :  { %v150_v10 = vpop.f32.mrf.mxu1 }
  0xeb   :  { %v379_v11 = vpop.f32.mrf.mxu1 }
  0xed   :  { %v227_v12 = vpop.f32.mrf.mxu1 }
  0xee   :  { %v228_v14 = vadd.f32 %v227_v12, %v150_v10 }
  0xef   :  { %v386_v15 = vpop.f32.mrf.mxu1 }
  0xf0   :  { %v238_v16 = vadd.f32 %v361_v13, %v228_v14 }
  0xf2   :  { %v239_v17 = vmax.f32 %v238_v16, 0.0 }
  0xf4   :  { %396 = vmatmul.mubr.msk.f32.vlgmr.msra.gmra.mxu0 %vm251_vm4, %v239_v17 }
 0x1b4   :  { %v321_v19 = vpop.f32.mrf.mxu0 }
 0x1b5   :  { %v322_v20 = vadd.f32 %v362_v18, %v321_v19 }
 0x1b6   :  { %v397_v21 = vpop.f32.mrf.mxu0 }
 0x1b7   :  { %v325_v23 = vmax.f32 %v322_v20, 0.0 }
 0x1b9   :  { %v333_v24 = vmul.f32 %v364_v22, %v325_v23 }
 0x1bb   :  { %v334_v25 = vsel %vm251_vm4, %v333_v24, 0.0 }
 0x1bc   :  { %335 = vadd.xlane.f32.xlu0 %v334_v25 }
 0x245   :  { %v336_v27 = vpop.xlane.xlu0 %335 }
 0x246   :  { %v339_v28 = vadd.f32 %v338_v26, %v336_v27 }
 0x248   :  { %340 = vst [vmem:[#allocation9] sm:$0xff] %v339_v28 }
 0x249   :  { %477 = shalt.err (!%p474_p5)
}
 0x24a   :  { %350 = dma.vmem_to_hbm [thread:$0]  %s348_s14, 128, %s592_s9, [#allocation5]  }
 0x24b   :  { %490 = dma.done.wait [#allocation5], 128  }
 0x24c   :  { %491 = vsyncadd [#allocation5], 4294967168 }
 0x24d   :  { %354 = vsyncpa [#allocation4], 1 }
 0x24e   :  { %355 = vsyncpa [#allocation7], 1 }
 0x24f   :  { %356 = vsyncpa [#allocation5], 1 }

</bundles_post_ra>
